<compile_context>
chip_gen: v7x
topology: tpu7x:2x2x1
jax: 0.10.0
libtpu: 0.0.40
codegen_flags: <defaults>
</compile_context>

<pallas_src>
import math

import jax
import jax.numpy as jnp
from jax.experimental import pallas as pl
from jax.experimental.pallas import tpu as pltpu

_LANE = 128
_SUBLANE = {1: 32, 2: 16, 4: 8}                 # sublane tile per itemsize
_TARGET_STEP_BYTES = 8 * 1024 * 1024            # per-grid-step input DMA target


def _argmax_kernel_lane_dense(p_ref, idx_ref):
    # p_ref:   (T, C) probabilities in VMEM
    # idx_ref: (1, T) int32 argmax index, lane-dense (unmasked vst writeback)
    p = p_ref[...]
    tr, c = p.shape
    m = jnp.max(p, axis=-1, keepdims=True)                       # XLU reduce (hidden under DMA)
    iota = jax.lax.broadcasted_iota(jnp.int32, (tr, c), dimension=1)
    cand = jnp.where(p == m, iota, jnp.int32(c))                 # non-max -> sentinel c
    idx = jnp.min(cand, axis=-1)                                 # (T,) first index achieving max
    idx = jnp.minimum(idx, jnp.int32(c - 1))                     # NaN-row guard: keep index in range
    idx_ref[...] = idx.reshape(1, tr)                            # sublane->lane relayout on idle XLU


def _argmax_kernel_col(p_ref, idx_ref):
    # Fallback for vocab-scale C (tile_rows < 128): (T, 1) column output.
    p = p_ref[...]
    tr, c = p.shape
    m = jnp.max(p, axis=-1, keepdims=True)
    iota = jax.lax.broadcasted_iota(jnp.int32, (tr, c), dimension=1)
    cand = jnp.where(p == m, iota, jnp.int32(c))
    idx = jnp.min(cand, axis=-1, keepdims=True)
    idx_ref[...] = jnp.minimum(idx, jnp.int32(c - 1))


def _round_up(x, m):
    return ((x + m - 1) // m) * m


def _vmem_budget_and_limit():
    """Generation-aware (budget_for_tiling, scoped_vmem_limit) in bytes."""
    cap = None
    try:
        cap = int(pltpu.get_tpu_info().vmem_capacity_bytes)
    except Exception:
        cap = None
    if not cap or cap < (32 << 20):
        cap = 64 << 20                            # conservative (v7x-sized) fallback
    limit = min((cap * 3) // 4, 100 << 20)        # scoped VMEM ceiling (48 MiB v7x, 96 MiB v5e/v6e)
    budget = min((cap * 3) // 5, 72 << 20)        # what double-buffered tiles may consume
    return int(budget), int(limit)


def _pick_tile_rows(rows, num_classes, itemsize, budget_bytes):
    """Largest useful row tile: ~_TARGET_STEP_BYTES of input per grid step,
    within a lane-padding-aware double-buffered VMEM budget."""
    lanes = _round_up(num_classes, _LANE)
    row_in_bytes = itemsize * lanes                       # lane-padded input bytes per row
    # double-buffered input + double-buffered (1, T) int32 output (sublane-padded to 8)
    per_row_dense = 2 * row_in_bytes + 2 * 8 * 4

    t_budget = budget_bytes // max(per_row_dense, 1)
    tile = min(_TARGET_STEP_BYTES // max(row_in_bytes, 1), t_budget)
    # Prefer at least a 128-row (lane-dense) tile whenever the budget allows it.
    tile = max(tile, min(t_budget, _LANE))

    if tile >= rows:
        return rows                                       # single block == full array dims

    # Keep >= ~4 grid steps when rows allow, so v7x megacore has work for both TCs.
    if rows >= 4 * _LANE:
        tile = min(tile, _round_up(-(-rows // 4), _LANE))

    tile = (tile // _LANE) * _LANE
    if tile >= _LANE:
        return tile                                       # lane-dense multi-step path

    # Vocab-scale C fallback: column output, sublane-rounded row tile.
    # TODO(synk): if even an (8, C) block exceeds the budget, add a trailing
    # "arbitrary" C-axis with running-max/first-index scratch (pl.when
    # init/finalize) instead of shrinking tile_rows further.
    sub = _SUBLANE.get(itemsize, 8)
    per_row_col = 2 * row_in_bytes + 2 * 4 * _LANE        # (T,1) output lane-pads to 128
    tile = budget_bytes // max(per_row_col, 1)
    tile = max(sub, (tile // sub) * sub)
    return min(tile, _round_up(rows, sub))


def probs_to_indices(probs, *, tile_rows=None):
    """argmax(probs, axis=-1) as int32, computed by a Pallas TPU kernel."""
    orig_shape = probs.shape
    C = int(orig_shape[-1])
    rows = int(math.prod(orig_shape[:-1]))
    p2d = probs.reshape(rows, C)

    budget, vmem_limit = _vmem_budget_and_limit()
    if tile_rows is None:
        tile_rows = _pick_tile_rows(rows, C, probs.dtype.itemsize, budget)
    tile_rows = int(tile_rows)

    grid = (pl.cdiv(rows, tile_rows),)                    # ragged last block: OOB writes dropped
    params = pltpu.CompilerParams(
        dimension_semantics=("parallel",),                # shard row tiles across v7x TCs
        vmem_limit_bytes=vmem_limit,
    )

    lane_dense = (tile_rows == rows) or (tile_rows % _LANE == 0)
    if lane_dense:
        idx = pl.pallas_call(
            _argmax_kernel_lane_dense,
            out_shape=jax.ShapeDtypeStruct((1, rows), jnp.int32),
            grid=grid,
            in_specs=[pl.BlockSpec((tile_rows, C), lambda i: (i, 0))],
            out_specs=pl.BlockSpec((1, tile_rows), lambda i: (0, i)),
            compiler_params=params,
        )(p2d)
        idx = idx.reshape(rows)
    else:
        idx = pl.pallas_call(
            _argmax_kernel_col,
            out_shape=jax.ShapeDtypeStruct((rows, 1), jnp.int32),
            grid=grid,
            in_specs=[pl.BlockSpec((tile_rows, C), lambda i: (i, 0))],
            out_specs=pl.BlockSpec((tile_rows, 1), lambda i: (i, 0)),
            compiler_params=params,
        )(p2d)
        idx = idx.reshape(rows)

    return idx.reshape(orig_shape[:-1])


def _indices_to_names(obj, idx_to_name):
    if isinstance(obj, list):
        return [_indices_to_names(o, idx_to_name) for o in obj]
    return idx_to_name[int(obj)]


class ProbsToNames:
    """JAX/Pallas port of torchoutil's ProbsToNames module."""

    def __init__(self, idx_to_name):
        self.idx_to_name = dict(idx_to_name)

    def __call__(self, probs):
        indices = probs_to_indices(probs)                 # Pallas kernel (device)
        indices = jax.device_get(indices)                 # host transfer
        return _indices_to_names(indices.tolist(), self.idx_to_name)  # dict lookup (host)


if __name__ == "__main__":
    key = jax.random.PRNGKey(0)
    B, S, C = 2, 8, 32
    logits = jax.random.normal(key, (B, S, C), dtype=jnp.float32)
    probs = jax.nn.softmax(logits, axis=-1)

    idx_to_name = {i: f"class_{i}" for i in range(C)}
    module = ProbsToNames(idx_to_name)

    # Auto-tiled (single lane-dense block here) vs. plain-JAX reference.
    idx = jax.block_until_ready(probs_to_indices(probs))
    ref = jnp.argmax(probs, axis=-1).astype(jnp.int32)
    assert idx.shape == (B, S) and idx.dtype == jnp.int32
    assert bool(jnp.all(idx == ref))

    # Multi-step lane-dense path (128-row tiles, ragged last block).
    probs_big = jax.nn.softmax(
        jax.random.normal(jax.random.PRNGKey(1), (300, C), dtype=jnp.float32), axis=-1)
    idx_big = jax.block_until_ready(probs_to_indices(probs_big, tile_rows=128))
    assert bool(jnp.all(idx_big == jnp.argmax(probs_big, axis=-1).astype(jnp.int32)))

    # Column-output fallback path (tile below 128 rows, ragged grid).
    probs2 = jax.nn.softmax(
        jax.random.normal(jax.random.PRNGKey(2), (3, 5, C), dtype=jnp.float32), axis=-1)
    idx2 = jax.block_until_ready(probs_to_indices(probs2, tile_rows=8))
    assert bool(jnp.all(idx2 == jnp.argmax(probs2, axis=-1).astype(jnp.int32)))

    # Full module semantics (names).
    names = module(probs)
    ref_names = [[idx_to_name[int(i)] for i in row] for row in jax.device_get(ref)]
    assert names == ref_names

    print("KERNEL_OK")
</pallas_src>

<mosaic_0001>
module attributes {stable_mosaic.version = 11 : i64} {
  func.func @_argmax_kernel_lane_dense(%arg0: i32, %arg1: memref<16x32xf32, #tpu.memory_space<vmem>>, %arg2: memref<1x16xi32, #tpu.memory_space<vmem>>) attributes {dimension_semantics = [#tpu.dimension_semantics<parallel>], iteration_bounds = array<i64: 1>, scalar_prefetch = 0 : i64, scratch_operands = 0 : i64, tpu.core_type = #tpu.core_type<tc>, window_params = [{transform_indices = @transform_0, window_bounds = array<i64: 16, 32>}, {transform_indices = @transform_1, window_bounds = array<i64: 1, 16>}]} {
    %c0 = arith.constant 0 : index
    %c0_0 = arith.constant 0 : index
    %0 = vector.load %arg1[%c0, %c0_0] : memref<16x32xf32, #tpu.memory_space<vmem>>, vector<16x32xf32>
    %cst = arith.constant dense<0xFF800000> : vector<16xf32>
    %1 = vector.multi_reduction <maximumf>, %0, %cst [1] : vector<16x32xf32> to vector<16xf32>
    %2 = vector.shape_cast %1 : vector<16xf32> to vector<16x1xf32>
    %3 = tpu.iota {dimensions = array<i32: 1>} : vector<16x32xi32>
    %4 = vector.broadcast %2 : vector<16x1xf32> to vector<16x32xf32>
    %5 = arith.cmpf oeq, %0, %4 : vector<16x32xf32>
    %c32_i32 = arith.constant 32 : i32
    %6 = vector.broadcast %c32_i32 : i32 to vector<16x32xi32>
    %7 = arith.select %5, %3, %6 : vector<16x32xi1>, vector<16x32xi32>
    %cst_1 = arith.constant dense<2147483647> : vector<16xi32>
    %8 = vector.multi_reduction <minsi>, %7, %cst_1 [1] : vector<16x32xi32> to vector<16xi32>
    %c31_i32 = arith.constant 31 : i32
    %9 = vector.broadcast %c31_i32 : i32 to vector<16xi32>
    %10 = arith.minsi %8, %9 : vector<16xi32>
    %11 = vector.shape_cast %10 : vector<16xi32> to vector<1x16xi32>
    %c0_2 = arith.constant 0 : index
    %c0_3 = arith.constant 0 : index
    %12 = vector.load %arg2[%c0_2, %c0_3] : memref<1x16xi32, #tpu.memory_space<vmem>>, vector<1x16xi32>
    tpu.vector_store %arg2[%c0_2, %c0_3], %11 {strides = array<i32>} : memref<1x16xi32, #tpu.memory_space<vmem>>, vector<1x16xi32>,
    return
  }
  func.func @transform_0(%arg0: i32) -> (i32, i32) {
    %c0_i32 = arith.constant 0 : i32
    %c0_i32_0 = arith.constant 0 : i32
    return %arg0, %c0_i32 : i32, i32
  }
  func.func @transform_1(%arg0: i32) -> (i32, i32) {
    %c0_i32 = arith.constant 0 : i32
    %c0_i32_0 = arith.constant 0 : i32
    return %c0_i32, %arg0 : i32, i32
  }
}

</mosaic_0001>

<bundles_post_ra>
// kernel: tpu_custom_call.1
= control target key start
LH: loop header
LB: loop body
LE: loop exit
PB: predicated region body
PF: predicated region fallthrough
CT: control target
= control target key end

     0   :  { %6 = vsyncpa [#allocation3], 0  ;;  %s194_s0 = inlined_call_operand.hbm [shape: f32[16,32], index: 0, kind: input, shape index: {}]   ;;  %s195_s1 = inlined_call_operand.hbm [shape: s32[1,16], index: 1, kind: output, shape index: {}]  }
   0x1   :  { %7 = vsyncpa [#allocation4], 0  ;;  %s152_s6 = smov [#allocation2]   ;;  %s104_s10 = scalar_lea.hbm %s194_s0, 256 }
   0x2   :  { %s13_s7 = sshll.u32 %s152_s6, 4  ;;  %p105_p0 = scmp.ne.s32.totalorder %s194_s0, %s104_s10  ;;  %s14_s7 = int_to_ptr.vmem [resolvable:$true] %s13_s7 }
   0x3   :  { %p108_p1 = scmp.lt.u32.totalorder %s104_s10, %s194_s0 }
   0x5   :  { %p110_p2 = pnand %p108_p1, %p105_p0 }
   0x7   :  { %113 = shalt.err (!%p110_p2)
}
   0x8   :  { %s114_s15 = scalar_lea.vmem %s14_s7, 256  ;;  %p119_p4 = scmp.lt.s32.totalorder %s14_s7, %s14_s7 }
   0x9   :  { %p115_p3 = scmp.ne.s32.totalorder %s14_s7, %s114_s15  ;;  %p120_p5 = scmp.lt.s32.totalorder %s114_s15, %s114_s15 }
   0xb   :  { %p121_p6 = por %p120_p5, %p119_p4 }
   0xd   :  { %p122_p7 = pnand %p121_p6, %p115_p3 }
   0xf   :  { %125 = shalt.err (!%p122_p7)
}
  0x10   :  { %s153_s16 = smov 128   ;;  %s154_s17 = smov 8  }
  0x11   :  { %19 = dma.hbm_to_vmem [thread:$0]  %s194_s0, 256, %s14_s7, [#allocation3], %s153_s16, %s153_s16, %s154_s17  }
  0x12   :  { %148 = dma.done.wait [#allocation3], 256  }
  0x13   :  { %149 = vsyncadd [#allocation3], 4294967040  ;;  %vm25_vm0 = vcmask 261120   ;;  %v23_v0 = vld [vmem:[#allocation2] sm:$0xff]  ;;  %v24_v1 = vld [vmem:[#allocation2 + $0x8] sm:$0xff]  ;;  %v32_v4 = vlaneseq  ;;  %s155_s0 = smov [#allocation5]  }
  0x14   :  { %v26_v2 = vsel %vm25_vm0, %v23_v0, -inf  ;;  %v29_v3 = vsel %vm25_vm0, %v24_v1, -inf  ;;  %s91_s20 = sshll.u32 %s155_s0, 4  ;;  %vm81_vm7 = vcmask 130112   ;;  %vm83_vm8 = vcmask 122880   ;;  %s92_s20 = int_to_ptr.vmem [resolvable:$true] %s91_s20 }
  0x15   :  { %27 = vmax.xlane.f32.xlu0 %v26_v2  ;;  %v33_v5 = vand.u32 127, %v32_v4  ;;  %v73_v29 = vshrl.u32 %v32_v4, 7  ;;  %s126_s21 = scalar_lea.vmem %s92_s20, 16  ;;  %s130_s22 = scalar_lea.vmem %s92_s20, 32 }
  0x16   :  { %p127_p8 = scmp.ne.s32.totalorder %s92_s20, %s126_s21  ;;  %p131_p9 = scmp.lt.s32.totalorder %s92_s20, %s92_s20 }
  0x17   :  { %v76_v31 = vadd.s32 4294967288, %v33_v5  ;;  %v74_v35 = vsub.s32 %v33_v5, %v73_v29  ;;  %p132_p10 = scmp.lt.s32.totalorder %s130_s22, %s126_s21 }
  0x19   :  { %30 = vmax.xlane.f32.xlu0 %v29_v3  ;;  %v79_v36 = vsub.s32 %v76_v31, %v73_v29  ;;  %p133_p11 = por %p132_p10, %p131_p9 }
  0x1b   :  { %p134_p12 = pnand %p133_p11, %p127_p8 }
  0xa2   :  { %v28_v6 = vpop.xlane.xlu0 %27 }
  0xa3   :  { %vm34_vm1 = vcmp.eq.f32.partialorder %v23_v0, %v28_v6 }
  0xa4   :  { %v36_v7 = vsel %vm34_vm1, %v33_v5, 32 }
  0xa5   :  { %v38_v8 = vsel %vm25_vm0, %v36_v7, 2147483647 }
  0xa6   :  { %v31_v9 = vpop.xlane.xlu0 %30  ;;  %v40_v10 = vshra.s32 %v38_v8, 16  ;;  %v39_v16 = vand.u32 65535, %v38_v8 }
  0xa7   :  { %vm35_vm2 = vcmp.eq.f32.partialorder %v24_v1, %v31_v9 }
  0xa8   :  { %v37_v11 = vsel %vm35_vm2, %v33_v5, 32  ;;  %v42_v12 = vcvt.s32.f32 %v40_v10  ;;  %v41_v18 = vcvt.s32.f32 %v39_v16 }
  0xa9   :  { %v53_v13 = vsel %vm25_vm0, %v37_v11, 2147483647 }
  0xaa   :  { %43 = vmin.xlane.f32.xlu1 %v42_v12  ;;  %v55_v14 = vshra.s32 %v53_v13, 16  ;;  %v54_v19 = vand.u32 65535, %v53_v13 }
  0xac   :  { %v57_v15 = vcvt.s32.f32 %v55_v14  ;;  %v56_v22 = vcvt.s32.f32 %v54_v19 }
  0xae   :  { %58 = vmin.xlane.f32.xlu1 %v57_v15 }
 0x137   :  { %v44_v17 = vpop.xlane.xlu1 %43 }
 0x138   :  { %vm45_vm3 = vcmp.eq.f32.partialorder %v42_v12, %v44_v17  ;;  %v50_v24 = vcvt.f32.s32 %v44_v17 }
 0x139   :  { %v46_v20 = vsel %vm45_vm3, %v41_v18, inf }
 0x13a   :  { %47 = vmin.xlane.f32.xlu0 %v46_v20  ;;  %v51_v26 = vshll.u32 %v50_v24, 16 }
 0x13b   :  { %v59_v21 = vpop.xlane.xlu1 %58 }
 0x13c   :  { %vm60_vm4 = vcmp.eq.f32.partialorder %v57_v15, %v59_v21  ;;  %v65_v27 = vcvt.f32.s32 %v59_v21 }
 0x13d   :  { %v61_v23 = vsel %vm60_vm4, %v56_v22, inf }
 0x13e   :  { %62 = vmin.xlane.f32.xlu1 %v61_v23  ;;  %v66_v33 = vshll.u32 %v65_v27, 16 }
 0x1c7   :  { %v48_v25 = vpop.xlane.xlu0 %47 }
 0x1c8   :  { %v49_v28 = vcvt.f32.s32 %v48_v25 }
 0x1ca   :  { %v52_v30 = vadd.s32 %v51_v26, %v49_v28 }
 0x1cb   :  { %v63_v32 = vpop.xlane.xlu1 %62 }
 0x1cc   :  { %vm68_vm5 = vcmp.lt.s32.totalorder %v52_v30, 31  ;;  %v64_v34 = vcvt.f32.s32 %v63_v32 }
 0x1cd   :  { %v69_v38 = vsel %vm68_vm5, %v52_v30, 31 }
 0x1ce   :  { %v67_v37 = vadd.s32 %v66_v33, %v64_v34  ;;  %v75_v40 = vrot.slane %v69_v38, %v74_v35 }
 0x1d0   :  { %vm70_vm6 = vcmp.lt.s32.totalorder %v67_v37, 31 }
 0x1d1   :  { %v71_v39 = vsel %vm70_vm6, %v67_v37, 31 }
 0x1d2   :  { %v80_v41 = vrot.slane %v71_v39, %v79_v36 }
 0x1d4   :  { %v82_v42 = vsel %vm81_vm7, %v80_v41, %v75_v40 }
 0x1d5   :  { %84 = vst.msk [vmem:[#allocation5] sm:$0x1] %vm83_vm8, %v82_v42 }
 0x1d6   :  { %137 = shalt.err (!%p134_p12)
}
 0x1d7   :  { %s138_s25 = scalar_lea.hbm %s195_s1, 16 }
 0x1d8   :  { %p139_p13 = scmp.ne.s32.totalorder %s195_s1, %s138_s25  ;;  %p142_p0 = scmp.lt.u32.totalorder %s138_s25, %s195_s1 }
 0x1da   :  { %p144_p1 = pnand %p142_p0, %p139_p13 }
 0x1dc   :  { %147 = shalt.err (!%p144_p1)
}
 0x1dd   :  { %94 = dma.vmem_to_hbm [thread:$0]  %s92_s20, 16, %s195_s1, [#allocation4]  }
 0x1de   :  { %150 = dma.done.wait [#allocation4], 16  }
 0x1df   :  { %151 = vsyncadd [#allocation4], 4294967280 }
 0x1e0   :  { %98 = vsyncpa [#allocation3], 1 }
 0x1e1   :  { %99 = vsyncpa [#allocation4], 1 }

</bundles_post_ra>
